<compile_context>
chip_gen: v7x
topology: tpu7x:2x2x1
jax: 0.10.0
libtpu: 0.0.40
codegen_flags: <defaults>
</compile_context>

<pallas_src>
import math
import functools

import jax
import jax.numpy as jnp
from jax.experimental import pallas as pl
from jax.experimental.pallas import tpu as pltpu


# ---------------------------------------------------------------------------
# In-kernel helpers
# ---------------------------------------------------------------------------
def _norm_in_kernel(x, alpha, bias, eps):
    """torch Norm: alpha*(x-mean)/(std+eps)+bias, unbiased std (N-1 divisor).
    Exact reciprocal (review correctness concern)."""
    d = x.shape[-1]
    mean = jnp.mean(x, axis=-1, keepdims=True)
    xc = x - mean
    var = jnp.sum(xc * xc, axis=-1, keepdims=True) * (1.0 / (d - 1))
    std = jnp.sqrt(var)
    return alpha * xc / (std + eps) + bias


def encoder_layer_kernel(
    x_ref,
    wqkv_ref, bqkv_ref,
    a1_ref, g1_ref, a2_ref, g2_ref,
    w1_ref, c1_ref, w2_ref, c2_ref,
    o_ref,
    *, nhead, seq_len, eps,
):
    x = x_ref[...]                         # (R, D) f32, R = bb * seq_len
    R, D = x.shape
    S = seq_len
    bb = R // S
    N = bb * nhead
    dh = D // nhead
    scale = 1.0 / math.sqrt(dh)

    # ---- norm_1 (f32, exact reciprocal) ----
    x2 = _norm_in_kernel(x, a1_ref[...], g1_ref[...], eps)
    x2b = x2.astype(jnp.bfloat16)

    # ---- fused QKV projection: one bf16 MXU matmul, f32 accumulation ----
    qkv = jnp.dot(x2b, wqkv_ref[...],
                  preferred_element_type=jnp.float32) + bqkv_ref[...]   # (R, 3D)

    # ---- head split: batched minor transposes + tile-aligned reshapes only
    #      (dh == 8 == sublane tile, so the (bb, D, S) -> (N, dh, S) reshape is
    #      a pure re-grouping of sublane tiles into the leading batch dim) ----
    qkvT = jnp.swapaxes(qkv.reshape(bb, S, 3 * D), 1, 2)                # (bb, 3D, S)

    def heads(tT):  # (bb, D, S) f32 -> (N, S, dh) bf16
        return jnp.swapaxes(tT.reshape(N, dh, S), 1, 2).astype(jnp.bfloat16)

    qh = heads(qkvT[:, :D, :] * scale)      # scale folded into Q (in-kernel)
    kh = heads(qkvT[:, D:2 * D, :])
    vh = heads(qkvT[:, 2 * D:, :])

    # ---- attention: two single-batch-dim contractions ----
    s = jnp.einsum("nqd,nkd->nqk", qh, kh,
                   preferred_element_type=jnp.float32)                  # (N, S, S)
    s = s - jnp.max(s, axis=-1, keepdims=True)
    p = jnp.exp(s)
    p = p * pl.reciprocal(jnp.sum(p, axis=-1, keepdims=True), approx=True)
    ctx = jnp.einsum("nqk,nkd->nqd", p.astype(jnp.bfloat16), vh,
                     preferred_element_type=jnp.float32)                # (N, S, dh)

    # (N, S, dh) -> (R, D): one batched minor transpose, tile-aligned reshape,
    # one more batched minor transpose, leading merge.
    attn = jnp.swapaxes(
        jnp.swapaxes(ctx, 1, 2).reshape(bb, D, S), 1, 2).reshape(R, D)

    # ---- residual 1 (dropout_1 = identity in eval mode) ----
    x = x + attn

    # ---- norm_2 ----
    x2 = _norm_in_kernel(x, a2_ref[...], g2_ref[...], eps)
    # TODO(synk): threshold_value branch (x2[x2 < 0.15] = 0) omitted; module default is False.
    # TODO(synk): weight=True positional re-weighting branch omitted; module default is False.
    x2b = x2.astype(jnp.bfloat16)

    # ---- FeedForward (bf16 matmuls, f32 accumulation / elementwise) ----
    h1 = jnp.maximum(
        jnp.dot(x2b, w1_ref[...], preferred_element_type=jnp.float32) + c1_ref[...],
        0.0,
    )
    ff = jnp.dot(h1.astype(jnp.bfloat16), w2_ref[...],
                 preferred_element_type=jnp.float32) + c2_ref[...]

    # ---- residual 2 (dropout_2 = identity in eval mode) ----
    o_ref[...] = (x + ff).astype(o_ref.dtype)


# ---------------------------------------------------------------------------
# Wrapper
# ---------------------------------------------------------------------------
def _pick_batch_block(B, S, target_rows=512):
    """Batch elements per grid step.  Capped at B//2 so the grid has >=2
    'parallel' steps whenever B >= 2 (keeps both v7x TensorCores busy; on
    single-TC v5e/v6e the extra grid step costs ~0.35us).  For v6e production
    sizes raise target_rows (1024-2048 rows) for HBM-roofline-sized blocks."""
    bb = max(1, min(B, max(1, target_rows // S)))
    bb = min(bb, max(1, B // 2))
    while B % bb:
        bb -= 1
    return bb


def prepare_params(p):
    """One-time param prep: fuse QKV, cast matmul weights to bf16 persistently
    (no per-call casts in the hot path).  Norm params / biases stay f32."""
    return {
        "wqkv": jnp.concatenate([p["wq_t"], p["wk_t"], p["wv_t"]],
                                axis=1).astype(jnp.bfloat16),        # (D, 3D)
        "bqkv": jnp.concatenate([p["bq"], p["bk"], p["bv"]], axis=1),  # (1, 3D)
        "alpha1": p["alpha1"], "bias1": p["bias1"],
        "alpha2": p["alpha2"], "bias2": p["bias2"],
        "w1": p["w1_t"].astype(jnp.bfloat16), "b1": p["b1"],
        "w2": p["w2_t"].astype(jnp.bfloat16), "b2": p["b2"],
    }


def encoder_layer(x, kp, *, nhead, eps=1e-6, target_rows=512):
    B, S, D = x.shape
    F = kp["w1"].shape[1]
    dh = D // nhead
    bb = _pick_batch_block(B, S, target_rows)
    rows = bb * S
    grid = (B // bb,)

    x_flat = x.reshape(B * S, D)

    def rep(shape):   # whole-array operand, same block every grid step
        return pl.BlockSpec(shape, lambda i, _s=shape: (0,) * len(_s))

    in_specs = [
        pl.BlockSpec((rows, D), lambda i: (i, 0)),      # x rows
        rep((D, 3 * D)), rep((1, 3 * D)),               # fused QKV weight/bias
        rep((1, D)), rep((1, D)),                       # norm1 alpha, bias
        rep((1, D)), rep((1, D)),                       # norm2 alpha, bias
        rep((D, F)), rep((1, F)),                       # ff linear_1 w, b
        rep((F, D)), rep((1, D)),                       # ff linear_2 w, b
    ]

    kernel = functools.partial(encoder_layer_kernel,
                               nhead=nhead, seq_len=S, eps=eps)

    flops = (2 * B * S * D * (3 * D)            # fused QKV
             + 4 * B * nhead * S * S * dh       # scores + context
             + 4 * B * S * D * F)               # feed-forward
    transcendentals = B * nhead * S * S + 2 * B * S
    bytes_accessed = (2 * B * S * D * 4
                      + (3 * D * D + 2 * D * F) * 2
                      + (3 * D + 5 * D + F) * 4)

    out_flat = pl.pallas_call(
        kernel,
        out_shape=jax.ShapeDtypeStruct((B * S, D), x.dtype),
        grid_spec=pltpu.PrefetchScalarGridSpec(
            num_scalar_prefetch=0,
            grid=grid,
            in_specs=in_specs,
            out_specs=pl.BlockSpec((rows, D), lambda i: (i, 0)),
        ),
        compiler_params=pltpu.CompilerParams(
            dimension_semantics=("parallel",),
            # Weight-resident layout; 32 MiB scoped VMEM is safe on v5e/v6e/v7x.
            # TODO(synk): at production D/F on v7x (64 MiB physical VMEM),
            # stream the FF weights over an extra 'arbitrary' grid axis.
            vmem_limit_bytes=32 * 1024 * 1024,
        ),
        cost_estimate=pl.CostEstimate(
            flops=int(flops),
            transcendentals=int(transcendentals),
            bytes_accessed=int(bytes_accessed),
        ),
    )(
        x_flat,
        kp["wqkv"], kp["bqkv"],
        kp["alpha1"], kp["bias1"],
        kp["alpha2"], kp["bias2"],
        kp["w1"], kp["b1"], kp["w2"], kp["b2"],
    )
    return out_flat.reshape(B, S, D)


# ---------------------------------------------------------------------------
# Pure-JAX f32 reference mirroring the PyTorch forward (eval mode)
# ---------------------------------------------------------------------------
def _norm_ref(x, alpha, bias, eps):
    d = x.shape[-1]
    mean = jnp.mean(x, axis=-1, keepdims=True)
    var = jnp.sum((x - mean) ** 2, axis=-1, keepdims=True) / (d - 1)
    std = jnp.sqrt(var)
    return alpha * (x - mean) / (std + eps) + bias


def reference_forward(x, params, *, nhead, eps=1e-6):
    B, S, D = x.shape
    dh = D // nhead
    scale = 1.0 / math.sqrt(dh)

    x2 = _norm_ref(x, params["alpha1"], params["bias1"], eps)
    q = x2 @ params["wq_t"] + params["bq"]
    k = x2 @ params["wk_t"] + params["bk"]
    v = x2 @ params["wv_t"] + params["bv"]

    def heads(t):
        return jnp.transpose(t.reshape(B, S, nhead, dh), (0, 2, 1, 3))

    qh, kh, vh = heads(q), heads(k), heads(v)
    scores = jnp.einsum("bhqd,bhkd->bhqk", qh, kh) * scale
    p = jax.nn.softmax(scores, axis=-1)
    out = jnp.einsum("bhqk,bhkd->bhqd", p, vh)
    out = jnp.transpose(out, (0, 2, 1, 3)).reshape(B, S, D)
    x = x + out

    x2 = _norm_ref(x, params["alpha2"], params["bias2"], eps)
    h1 = jax.nn.relu(x2 @ params["w1_t"] + params["b1"])
    ff = h1 @ params["w2_t"] + params["b2"]
    return x + ff


def init_params(key, d_model, d_ff):
    ks = jax.random.split(key, 10)
    s = 0.1
    return {
        "wq_t": s * jax.random.normal(ks[0], (d_model, d_model), jnp.float32),
        "bq":   s * jax.random.normal(ks[1], (1, d_model), jnp.float32),
        "wk_t": s * jax.random.normal(ks[2], (d_model, d_model), jnp.float32),
        "bk":   s * jax.random.normal(ks[3], (1, d_model), jnp.float32),
        "wv_t": s * jax.random.normal(ks[4], (d_model, d_model), jnp.float32),
        "bv":   s * jax.random.normal(ks[5], (1, d_model), jnp.float32),
        "alpha1": jnp.ones((1, d_model), jnp.float32),
        "bias1":  jnp.zeros((1, d_model), jnp.float32),
        "alpha2": jnp.ones((1, d_model), jnp.float32),
        "bias2":  jnp.zeros((1, d_model), jnp.float32),
        "w1_t": s * jax.random.normal(ks[6], (d_model, d_ff), jnp.float32),
        "b1":   s * jax.random.normal(ks[7], (1, d_ff), jnp.float32),
        "w2_t": s * jax.random.normal(ks[8], (d_ff, d_model), jnp.float32),
        "b2":   s * jax.random.normal(ks[9], (1, d_model), jnp.float32),
    }


if __name__ == "__main__":
    B, S, D = 2, 8, 32          # batch, seq, d_model (= norm_in_channels)
    NHEAD = 4
    D_FF = 64

    key = jax.random.PRNGKey(0)
    kx, kp = jax.random.split(key)
    x = jax.random.normal(kx, (B, S, D), jnp.float32)
    params = init_params(kp, D, D_FF)
    kernel_params = prepare_params(params)   # one-time prep (fused QKV, bf16)

    out = encoder_layer(x, kernel_params, nhead=NHEAD)
    out = jax.block_until_ready(out)

    ref = reference_forward(x, params, nhead=NHEAD)
    assert out.shape == (B, S, D)
    # Kernel matmuls use bf16 operands (f32 accumulation); norms use exact
    # reciprocals and only the softmax denominator uses the approximate EUP
    # reciprocal, so the tolerance is tighter than before.
    assert jnp.allclose(out, ref, atol=2e-2, rtol=2e-2), "mismatch vs reference"

    print("KERNEL_OK")
</pallas_src>

<mosaic_0001>
module attributes {stable_mosaic.version = 11 : i64} {
  func.func @encoder_layer_kernel(%arg0: i32, %arg1: memref<8x32xf32, #tpu.memory_space<vmem>>, %arg2: memref<32x96xbf16, #tpu.memory_space<vmem>>, %arg3: memref<1x96xf32, #tpu.memory_space<vmem>>, %arg4: memref<1x32xf32, #tpu.memory_space<vmem>>, %arg5: memref<1x32xf32, #tpu.memory_space<vmem>>, %arg6: memref<1x32xf32, #tpu.memory_space<vmem>>, %arg7: memref<1x32xf32, #tpu.memory_space<vmem>>, %arg8: memref<32x64xbf16, #tpu.memory_space<vmem>>, %arg9: memref<1x64xf32, #tpu.memory_space<vmem>>, %arg10: memref<64x32xbf16, #tpu.memory_space<vmem>>, %arg11: memref<1x32xf32, #tpu.memory_space<vmem>>, %arg12: memref<8x32xf32, #tpu.memory_space<vmem>>) attributes {dimension_semantics = [#tpu.dimension_semantics<parallel>], iteration_bounds = array<i64: 2>, scalar_prefetch = 0 : i64, scratch_operands = 0 : i64, tpu.core_type = #tpu.core_type<tc>, window_params = [{transform_indices = @transform_0, window_bounds = array<i64: 8, 32>}, {pipeline_mode = #tpu.pipeline_mode<synchronous>, transform_indices = @transform_1, window_bounds = array<i64: 32, 96>}, {pipeline_mode = #tpu.pipeline_mode<synchronous>, transform_indices = @transform_2, window_bounds = array<i64: 1, 96>}, {pipeline_mode = #tpu.pipeline_mode<synchronous>, transform_indices = @transform_3, window_bounds = array<i64: 1, 32>}, {pipeline_mode = #tpu.pipeline_mode<synchronous>, transform_indices = @transform_4, window_bounds = array<i64: 1, 32>}, {pipeline_mode = #tpu.pipeline_mode<synchronous>, transform_indices = @transform_5, window_bounds = array<i64: 1, 32>}, {pipeline_mode = #tpu.pipeline_mode<synchronous>, transform_indices = @transform_6, window_bounds = array<i64: 1, 32>}, {pipeline_mode = #tpu.pipeline_mode<synchronous>, transform_indices = @transform_7, window_bounds = array<i64: 32, 64>}, {pipeline_mode = #tpu.pipeline_mode<synchronous>, transform_indices = @transform_8, window_bounds = array<i64: 1, 64>}, {pipeline_mode = #tpu.pipeline_mode<synchronous>, transform_indices = @transform_9, window_bounds = array<i64: 64, 32>}, {pipeline_mode = #tpu.pipeline_mode<synchronous>, transform_indices = @transform_10, window_bounds = array<i64: 1, 32>}, {transform_indices = @transform_11, window_bounds = array<i64: 8, 32>}]} {
    %c0 = arith.constant 0 : index
    %c0_0 = arith.constant 0 : index
    %0 = vector.load %arg1[%c0, %c0_0] : memref<8x32xf32, #tpu.memory_space<vmem>>, vector<8x32xf32>
    %c0_1 = arith.constant 0 : index
    %c0_2 = arith.constant 0 : index
    %1 = vector.load %arg4[%c0_1, %c0_2] : memref<1x32xf32, #tpu.memory_space<vmem>>, vector<1x32xf32>
    %c0_3 = arith.constant 0 : index
    %c0_4 = arith.constant 0 : index
    %2 = vector.load %arg5[%c0_3, %c0_4] : memref<1x32xf32, #tpu.memory_space<vmem>>, vector<1x32xf32>
    %cst = arith.constant dense<0.000000e+00> : vector<8xf32>
    %3 = vector.multi_reduction <add>, %0, %cst [1] : vector<8x32xf32> to vector<8xf32>
    %4 = vector.shape_cast %3 : vector<8xf32> to vector<8x1xf32>
    %cst_5 = arith.constant 3.200000e+01 : f32
    %5 = vector.broadcast %cst_5 : f32 to vector<8x1xf32>
    %6 = arith.divf %4, %5 : vector<8x1xf32>
    %7 = vector.broadcast %6 : vector<8x1xf32> to vector<8x32xf32>
    %8 = arith.subf %0, %7 : vector<8x32xf32>
    %9 = arith.mulf %8, %8 : vector<8x32xf32>
    %cst_6 = arith.constant dense<0.000000e+00> : vector<8xf32>
    %10 = vector.multi_reduction <add>, %9, %cst_6 [1] : vector<8x32xf32> to vector<8xf32>
    %11 = vector.shape_cast %10 : vector<8xf32> to vector<8x1xf32>
    %cst_7 = arith.constant 0.0322580636 : f32
    %12 = vector.broadcast %cst_7 : f32 to vector<8x1xf32>
    %13 = arith.mulf %11, %12 : vector<8x1xf32>
    %14 = math.sqrt %13 : vector<8x1xf32>
    %15 = vector.broadcast %1 : vector<1x32xf32> to vector<8x32xf32>
    %16 = arith.mulf %15, %8 : vector<8x32xf32>
    %cst_8 = arith.constant 9.99999997E-7 : f32
    %17 = vector.broadcast %cst_8 : f32 to vector<8x1xf32>
    %18 = arith.addf %14, %17 : vector<8x1xf32>
    %19 = vector.broadcast %18 : vector<8x1xf32> to vector<8x32xf32>
    %20 = arith.divf %16, %19 : vector<8x32xf32>
    %21 = vector.broadcast %2 : vector<1x32xf32> to vector<8x32xf32>
    %22 = arith.addf %20, %21 : vector<8x32xf32>
    %23 = arith.truncf %22 : vector<8x32xf32> to vector<8x32xbf16>
    %c0_9 = arith.constant 0 : index
    %c0_10 = arith.constant 0 : index
    %24 = vector.load %arg2[%c0_9, %c0_10] : memref<32x96xbf16, #tpu.memory_space<vmem>>, vector<32x96xbf16>
    %cst_11 = arith.constant dense<0.000000e+00> : vector<8x96xf32>
    %25 = tpu.matmul %23, %24, %cst_11 {dimension_numbers = #tpu.dot_dimension_numbers<[1], [0], [0], [1], [0, 0, 1, 1], [], []>} : vector<8x32xbf16>, vector<32x96xbf16>, vector<8x96xf32> -> vector<8x96xf32>
    %c0_12 = arith.constant 0 : index
    %c0_13 = arith.constant 0 : index
    %26 = vector.load %arg3[%c0_12, %c0_13] : memref<1x96xf32, #tpu.memory_space<vmem>>, vector<1x96xf32>
    %27 = vector.broadcast %26 : vector<1x96xf32> to vector<8x96xf32>
    %28 = arith.addf %25, %27 : vector<8x96xf32>
    %29 = vector.shape_cast %28 : vector<8x96xf32> to vector<1x8x96xf32>
    %30 = tpu.transpose %29, [0, 2, 1] : vector<1x8x96xf32> -> vector<1x96x8xf32>
    %31 = vector.extract_strided_slice %30 {offsets = [0, 0, 0], sizes = [1, 32, 8], strides = [1, 1, 1]} : vector<1x96x8xf32> to vector<1x32x8xf32>
    %cst_14 = arith.constant 0.353553385 : f32
    %32 = vector.broadcast %cst_14 : f32 to vector<1x32x8xf32>
    %33 = arith.mulf %31, %32 : vector<1x32x8xf32>
    %34 = vector.shape_cast %33 : vector<1x32x8xf32> to vector<4x8x8xf32>
    %35 = tpu.transpose %34, [0, 2, 1] : vector<4x8x8xf32> -> vector<4x8x8xf32>
    %36 = arith.truncf %35 : vector<4x8x8xf32> to vector<4x8x8xbf16>
    %37 = vector.extract_strided_slice %30 {offsets = [0, 32, 0], sizes = [1, 32, 8], strides = [1, 1, 1]} : vector<1x96x8xf32> to vector<1x32x8xf32>
    %38 = vector.shape_cast %37 : vector<1x32x8xf32> to vector<4x8x8xf32>
    %39 = tpu.transpose %38, [0, 2, 1] : vector<4x8x8xf32> -> vector<4x8x8xf32>
    %40 = arith.truncf %39 : vector<4x8x8xf32> to vector<4x8x8xbf16>
    %41 = vector.extract_strided_slice %30 {offsets = [0, 64, 0], sizes = [1, 32, 8], strides = [1, 1, 1]} : vector<1x96x8xf32> to vector<1x32x8xf32>
    %42 = vector.shape_cast %41 : vector<1x32x8xf32> to vector<4x8x8xf32>
    %43 = tpu.transpose %42, [0, 2, 1] : vector<4x8x8xf32> -> vector<4x8x8xf32>
    %44 = arith.truncf %43 : vector<4x8x8xf32> to vector<4x8x8xbf16>
    "tpu.trace_start"() <{level = 10 : i32, message = "nqd,nkd->nqk"}> : () -> ()
    %cst_15 = arith.constant dense<0.000000e+00> : vector<4x8x8xf32>
    %45 = tpu.matmul %36, %40, %cst_15 {dimension_numbers = #tpu.dot_dimension_numbers<[2], [2], [1], [1], [0, 0, 0, 1, 1, 1], [0], [0]>} : vector<4x8x8xbf16>, vector<4x8x8xbf16>, vector<4x8x8xf32> -> vector<4x8x8xf32>
    "tpu.trace_stop"() : () -> ()
    %cst_16 = arith.constant dense<0xFF800000> : vector<4x8xf32>
    %46 = vector.multi_reduction <maximumf>, %45, %cst_16 [2] : vector<4x8x8xf32> to vector<4x8xf32>
    %47 = vector.shape_cast %46 : vector<4x8xf32> to vector<4x8x1xf32>
    %48 = vector.broadcast %47 : vector<4x8x1xf32> to vector<4x8x8xf32>
    %49 = arith.subf %45, %48 : vector<4x8x8xf32>
    %50 = math.exp %49 : vector<4x8x8xf32>
    %cst_17 = arith.constant dense<0.000000e+00> : vector<4x8xf32>
    %51 = vector.multi_reduction <add>, %50, %cst_17 [2] : vector<4x8x8xf32> to vector<4x8xf32>
    %52 = vector.shape_cast %51 : vector<4x8xf32> to vector<4x8x1xf32>
    %53 = tpu.reciprocal %52 {approx = true} : vector<4x8x1xf32> -> vector<4x8x1xf32>
    %54 = vector.broadcast %53 : vector<4x8x1xf32> to vector<4x8x8xf32>
    %55 = arith.mulf %50, %54 : vector<4x8x8xf32>
    %56 = arith.truncf %55 : vector<4x8x8xf32> to vector<4x8x8xbf16>
    "tpu.trace_start"() <{level = 10 : i32, message = "nqk,nkd->nqd"}> : () -> ()
    %cst_18 = arith.constant dense<0.000000e+00> : vector<4x8x8xf32>
    %57 = tpu.matmul %56, %44, %cst_18 {dimension_numbers = #tpu.dot_dimension_numbers<[2], [1], [1], [2], [0, 0, 0, 1, 1, 2], [0], [0]>} : vector<4x8x8xbf16>, vector<4x8x8xbf16>, vector<4x8x8xf32> -> vector<4x8x8xf32>
    "tpu.trace_stop"() : () -> ()
    %58 = tpu.transpose %57, [0, 2, 1] : vector<4x8x8xf32> -> vector<4x8x8xf32>
    %59 = vector.shape_cast %58 : vector<4x8x8xf32> to vector<1x32x8xf32>
    %60 = tpu.transpose %59, [0, 2, 1] : vector<1x32x8xf32> -> vector<1x8x32xf32>
    %61 = vector.shape_cast %60 : vector<1x8x32xf32> to vector<8x32xf32>
    %62 = arith.addf %0, %61 : vector<8x32xf32>
    %c0_19 = arith.constant 0 : index
    %c0_20 = arith.constant 0 : index
    %63 = vector.load %arg6[%c0_19, %c0_20] : memref<1x32xf32, #tpu.memory_space<vmem>>, vector<1x32xf32>
    %c0_21 = arith.constant 0 : index
    %c0_22 = arith.constant 0 : index
    %64 = vector.load %arg7[%c0_21, %c0_22] : memref<1x32xf32, #tpu.memory_space<vmem>>, vector<1x32xf32>
    %cst_23 = arith.constant dense<0.000000e+00> : vector<8xf32>
    %65 = vector.multi_reduction <add>, %62, %cst_23 [1] : vector<8x32xf32> to vector<8xf32>
    %66 = vector.shape_cast %65 : vector<8xf32> to vector<8x1xf32>
    %cst_24 = arith.constant 3.200000e+01 : f32
    %67 = vector.broadcast %cst_24 : f32 to vector<8x1xf32>
    %68 = arith.divf %66, %67 : vector<8x1xf32>
    %69 = vector.broadcast %68 : vector<8x1xf32> to vector<8x32xf32>
    %70 = arith.subf %62, %69 : vector<8x32xf32>
    %71 = arith.mulf %70, %70 : vector<8x32xf32>
    %cst_25 = arith.constant dense<0.000000e+00> : vector<8xf32>
    %72 = vector.multi_reduction <add>, %71, %cst_25 [1] : vector<8x32xf32> to vector<8xf32>
    %73 = vector.shape_cast %72 : vector<8xf32> to vector<8x1xf32>
    %cst_26 = arith.constant 0.0322580636 : f32
    %74 = vector.broadcast %cst_26 : f32 to vector<8x1xf32>
    %75 = arith.mulf %73, %74 : vector<8x1xf32>
    %76 = math.sqrt %75 : vector<8x1xf32>
    %77 = vector.broadcast %63 : vector<1x32xf32> to vector<8x32xf32>
    %78 = arith.mulf %77, %70 : vector<8x32xf32>
    %cst_27 = arith.constant 9.99999997E-7 : f32
    %79 = vector.broadcast %cst_27 : f32 to vector<8x1xf32>
    %80 = arith.addf %76, %79 : vector<8x1xf32>
    %81 = vector.broadcast %80 : vector<8x1xf32> to vector<8x32xf32>
    %82 = arith.divf %78, %81 : vector<8x32xf32>
    %83 = vector.broadcast %64 : vector<1x32xf32> to vector<8x32xf32>
    %84 = arith.addf %82, %83 : vector<8x32xf32>
    %85 = arith.truncf %84 : vector<8x32xf32> to vector<8x32xbf16>
    %c0_28 = arith.constant 0 : index
    %c0_29 = arith.constant 0 : index
    %86 = vector.load %arg8[%c0_28, %c0_29] : memref<32x64xbf16, #tpu.memory_space<vmem>>, vector<32x64xbf16>
    %cst_30 = arith.constant dense<0.000000e+00> : vector<8x64xf32>
    %87 = tpu.matmul %85, %86, %cst_30 {dimension_numbers = #tpu.dot_dimension_numbers<[1], [0], [0], [1], [0, 0, 1, 1], [], []>} : vector<8x32xbf16>, vector<32x64xbf16>, vector<8x64xf32> -> vector<8x64xf32>
    %c0_31 = arith.constant 0 : index
    %c0_32 = arith.constant 0 : index
    %88 = vector.load %arg9[%c0_31, %c0_32] : memref<1x64xf32, #tpu.memory_space<vmem>>, vector<1x64xf32>
    %89 = vector.broadcast %88 : vector<1x64xf32> to vector<8x64xf32>
    %90 = arith.addf %87, %89 : vector<8x64xf32>
    %cst_33 = arith.constant 0.000000e+00 : f32
    %91 = vector.broadcast %cst_33 : f32 to vector<8x64xf32>
    %92 = arith.maximumf %90, %91 : vector<8x64xf32>
    %93 = arith.truncf %92 : vector<8x64xf32> to vector<8x64xbf16>
    %c0_34 = arith.constant 0 : index
    %c0_35 = arith.constant 0 : index
    %94 = vector.load %arg10[%c0_34, %c0_35] : memref<64x32xbf16, #tpu.memory_space<vmem>>, vector<64x32xbf16>
    %cst_36 = arith.constant dense<0.000000e+00> : vector<8x32xf32>
    %95 = tpu.matmul %93, %94, %cst_36 {dimension_numbers = #tpu.dot_dimension_numbers<[1], [0], [0], [1], [0, 0, 1, 1], [], []>} : vector<8x64xbf16>, vector<64x32xbf16>, vector<8x32xf32> -> vector<8x32xf32>
    %c0_37 = arith.constant 0 : index
    %c0_38 = arith.constant 0 : index
    %96 = vector.load %arg11[%c0_37, %c0_38] : memref<1x32xf32, #tpu.memory_space<vmem>>, vector<1x32xf32>
    %97 = vector.broadcast %96 : vector<1x32xf32> to vector<8x32xf32>
    %98 = arith.addf %95, %97 : vector<8x32xf32>
    %99 = arith.addf %62, %98 : vector<8x32xf32>
    %c0_39 = arith.constant 0 : index
    %c0_40 = arith.constant 0 : index
    %100 = vector.load %arg12[%c0_39, %c0_40] : memref<8x32xf32, #tpu.memory_space<vmem>>, vector<8x32xf32>
    tpu.vector_store %arg12[%c0_39, %c0_40], %99 {strides = array<i32>} : memref<8x32xf32, #tpu.memory_space<vmem>>, vector<8x32xf32>,
    return
  }
  func.func @transform_0(%arg0: i32) -> (i32, i32) {
    %c0_i32 = arith.constant 0 : i32
    %c0_i32_0 = arith.constant 0 : i32
    return %arg0, %c0_i32 : i32, i32
  }
  func.func @transform_1(%arg0: i32) -> (i32, i32) {
    %c0_i32 = arith.constant 0 : i32
    %c0_i32_0 = arith.constant 0 : i32
    %c0_i32_1 = arith.constant 0 : i32
    return %c0_i32, %c0_i32_0 : i32, i32
  }
  func.func @transform_2(%arg0: i32) -> (i32, i32) {
    %c0_i32 = arith.constant 0 : i32
    %c0_i32_0 = arith.constant 0 : i32
    %c0_i32_1 = arith.constant 0 : i32
    return %c0_i32, %c0_i32_0 : i32, i32
  }
  func.func @transform_3(%arg0: i32) -> (i32, i32) {
    %c0_i32 = arith.constant 0 : i32
    %c0_i32_0 = arith.constant 0 : i32
    %c0_i32_1 = arith.constant 0 : i32
    return %c0_i32, %c0_i32_0 : i32, i32
  }
  func.func @transform_4(%arg0: i32) -> (i32, i32) {
    %c0_i32 = arith.constant 0 : i32
    %c0_i32_0 = arith.constant 0 : i32
    %c0_i32_1 = arith.constant 0 : i32
    return %c0_i32, %c0_i32_0 : i32, i32
  }
  func.func @transform_5(%arg0: i32) -> (i32, i32) {
    %c0_i32 = arith.constant 0 : i32
    %c0_i32_0 = arith.constant 0 : i32
    %c0_i32_1 = arith.constant 0 : i32
    return %c0_i32, %c0_i32_0 : i32, i32
  }
  func.func @transform_6(%arg0: i32) -> (i32, i32) {
    %c0_i32 = arith.constant 0 : i32
    %c0_i32_0 = arith.constant 0 : i32
    %c0_i32_1 = arith.constant 0 : i32
    return %c0_i32, %c0_i32_0 : i32, i32
  }
  func.func @transform_7(%arg0: i32) -> (i32, i32) {
    %c0_i32 = arith.constant 0 : i32
    %c0_i32_0 = arith.constant 0 : i32
    %c0_i32_1 = arith.constant 0 : i32
    return %c0_i32, %c0_i32_0 : i32, i32
  }
  func.func @transform_8(%arg0: i32) -> (i32, i32) {
    %c0_i32 = arith.constant 0 : i32
    %c0_i32_0 = arith.constant 0 : i32
    %c0_i32_1 = arith.constant 0 : i32
    return %c0_i32, %c0_i32_0 : i32, i32
  }
  func.func @transform_9(%arg0: i32) -> (i32, i32) {
    %c0_i32 = arith.constant 0 : i32
    %c0_i32_0 = arith.constant 0 : i32
    %c0_i32_1 = arith.constant 0 : i32
    return %c0_i32, %c0_i32_0 : i32, i32
  }
  func.func @transform_10(%arg0: i32) -> (i32, i32) {
    %c0_i32 = arith.constant 0 : i32
    %c0_i32_0 = arith.constant 0 : i32
    %c0_i32_1 = arith.constant 0 : i32
    return %c0_i32, %c0_i32_0 : i32, i32
  }
  func.func @transform_11(%arg0: i32) -> (i32, i32) {
    %c0_i32 = arith.constant 0 : i32
    %c0_i32_0 = arith.constant 0 : i32
    return %arg0, %c0_i32 : i32, i32
  }
}

</mosaic_0001>

<bundles_post_ra>
// kernel: tpu_custom_call.1
= control target key start
LH: loop header
LB: loop body
LE: loop exit
PB: predicated region body
PF: predicated region fallthrough
CT: control target
= control target key end

     0   :  { %s2352_s0 = inlined_call_operand.vmem [shape: f32[16,32], index: 0, kind: input, shape index: {}]   ;;  %s2353_s1 = inlined_call_operand.vmem [shape: bf16[32,96], index: 1, kind: input, shape index: {}]   ;;  %s2354_s2 = inlined_call_operand.vmem [shape: f32[1,96], index: 2, kind: input, shape index: {}]   ;;  %s2355_s3 = inlined_call_operand.vmem [shape: f32[1,32], index: 3, kind: input, shape index: {}]   ;;  %s2356_s4 = inlined_call_operand.vmem [shape: f32[1,32], index: 4, kind: input, shape index: {}]   ;;  %s2357_s5 = inlined_call_operand.vmem [shape: f32[1,32], index: 5, kind: input, shape index: {}]   ;;  %s2358_s6 = inlined_call_operand.vmem [shape: f32[1,32], index: 6, kind: input, shape index: {}]   ;;  %s2359_s7 = inlined_call_operand.vmem [shape: bf16[32,64], index: 7, kind: input, shape index: {}]   ;;  %s2360_s8 = inlined_call_operand.vmem [shape: f32[1,64], index: 8, kind: input, shape index: {}]   ;;  %s2361_s9 = inlined_call_operand.vmem [shape: bf16[64,32], index: 9, kind: input, shape index: {}]   ;;  %s2362_s10 = inlined_call_operand.vmem [shape: f32[1,32], index: 10, kind: input, shape index: {}]   ;;  %s2363_s11 = inlined_call_operand.hbm [shape: f32[16,32], index: 11, kind: output, shape index: {}]  }
   0x1   :  { %2364 = sst [smem:[#allocation5_spill]] %s2352_s0 }
   0x2   :  { %16 = vsyncpa [#allocation3], 0 }
   0x3   :  { %18 = vsyncpa [#allocation3 + $0x1], 0  ;;  %s2116_s17 = smov 0   ;;  %s2118_s18 = smov 0  }
   0x4   :  { %s2120_s19 = smov 0   ;;  %s2122_s20 = smov 0  }
   0x5 LB: > { %s2137_s21 = sadd.s32 4294967295, %s2051_s20   ;;  %s1763_s22 = sadd.s32 4294967294, %s2051_s20   ;;  %s2051_s20 = sphi %s2122_s20, %s2371_s20   ;;  %s2047_s19 = sphi %s2120_s19, %s2370_s19   ;;  %s2043_s18 = sphi %s2118_s18, %s2369_s18   ;;  %s2039_s17 = sphi %s2116_s17, %s2368_s17  }
   0x6   : > { %s2141_s23 = sadd.s32 1, %s2051_s20   ;;  %s267_s24 = sadd.s32 1, %s2047_s19 }
   0x7   : > { %s264_s25 = ssub.s32 %s2051_s20, %s2141_s23  ;;  %p277_p0 = scmp.ne.s32.totalorder %s2047_s19, %s2043_s18 }
   0x8   : > { %p265_p1 = scmp.eq.s32.totalorder %s264_s25, 0  ;;  %p278_p2 = scmp.eq.s32.totalorder %s2137_s21, 1 }
   0x9   : > { %p283_p3 = scmp.ne.s32.totalorder %s2043_s18, %s2039_s17  ;;  %p284_p4 = scmp.eq.s32.totalorder %s1763_s22, 1 }
   0xa   : > { %s2152_s26 = scalar_select %p265_p1, %s2047_s19, %s267_s24  }
   0xb   : > { %p2154_p5 = por %p278_p2, %p277_p0  ;;  %p2158_p6 = por %p284_p4, %p283_p3 }
   0xc   : > { %p1766_p7 = scmp.ge.s32.totalorder %s2051_s20, 1  ;;  %p339_p8 = scmp.lt.s32.totalorder %s2051_s20, 3 }
   0xe   : > { %p340_p9 = pnand %p1766_p7, %p339_p8 }
   0xf   : > { %p378_p10 = scmp.lt.s32.totalorder (!%p340_p9), %s2137_s21, 1  ;;  %vm386_vm0 = vcmask (!%p340_p9), 261120   ;;  %s2367_s0 = sld [smem:[#allocation5_spill]] (!%p340_p9)  ;;  %v1957_v7 = vld [vmem:[%s2353_s1] sm:$0xff] (!%p340_p9)   ;;  %v2053_v8 = vmov (!%p340_p9), 0.0   ;;  %vm2054_vm1 = vmmov (!%p340_p9), 0  }
  0x10   : > { %343 = sbr.rel (%p340_p9) target bundleno = 2743 (0xab7), region = 64  ;;  %1826 = vmatprep.subr.bf16.mxu1 (!%p340_p9), %v2053_v8  ;;  %1830 = vmatprep.mubr.msk.bf16.mxu1 (!%p340_p9), %vm2054_vm1, %v2053_v8  ;;  %v1958_v9 = vld [vmem:[%s2353_s1 + $0x8] sm:$0xff] (!%p340_p9)   ;;  %v1769_v18 = vld [vmem:[%s2355_s3] ss:$0 sm:$0xff] (!%p340_p9)  ;;  %vm921_vm4 = vcmask (!%p340_p9), 64512   ;;  %vm1157_vm5 = vcmask (!%p340_p9), 1043456  }
  0x11   : > { %1827 = vmatpush3.bf16.msra.mxu1 (!%p340_p9), %v1957_v7  ;;  %1840 = vmatprep.subr.bf16.mxu0 (!%p340_p9), %v2053_v8  ;;  %v1770_v21 = vld [vmem:[%s2356_s4] ss:$0 sm:$0xff] (!%p340_p9)  ;;  %vm1644_vm8 = vcmask (!%p340_p9), 523264   ;;  %s375_s13 = sand.u32 (!%p340_p9), 1, %s2043_s18   ;;  %s1796_s22 = sshll.u32 (!%p340_p9), %s2137_s21, 7 }
  0x12   : > { %1828 = vmatprep.subr.bf16.mxu1 (!%p340_p9), %v2053_v8  ;;  %1842 = vmatprep.mubr.msk.bf16.mxu0 (!%p340_p9), %vm2054_vm1, %v2053_v8  ;;  %v1771_v25 = vld [vmem:[%s2354_s2] ss:$0 sm:$0xff] (!%p340_p9)  ;;  %s2309_s12 = scalar_lea.hbm (!%p340_p9), %s2363_s11, %s1796_s22  ;;  %s2055_s15 = smov (!%p340_p9), [#allocation2]  }
  0x13   : > { %s1993_s16 = sshll.u32 (!%p340_p9), %s2055_s15, 4  ;;  %s1994_s16 = int_to_ptr.vmem [resolvable:$false] %s1993_s16 }
  0x15   : > { %1829 = vmatpush3.bf16.msra.mxu1 (!%p340_p9), %v1958_v9 }
  0x16   : > { %1834 = vmatprep.subr.bf16.mxu1 (!%p340_p9), %v2053_v8 }
  0x17   : > { %s379_s29 = scalar_select %p378_p10, %s2137_s21, 1 }
  0x18   : > { %s1691_s21 = scalar_lea.sflag [#allocation3], %s375_s13 }
  0x19   : > { %s1768_s30 = sshll.u32 %s379_s29, 3 }
  0x1a   : > { %s381_s14 = scalar_lea.vmem %s2367_s0, %s1768_s30  ;;  %s1995_s0 = scalar_lea.vmem %s1994_s16, 256 }
  0x1b   : > { %v2169_v0 = vld [vmem:[%s381_s14] sm:$0xff]  ;;  %s1767_s14 = sshll.u32 %s375_s13, 3 }
  0x1c   : > { %v387_v1 = vsel %vm386_vm0, %v2169_v0, 0.0  ;;  %s377_s24 = scalar_lea.vmem [#allocation2], %s1767_s14 }
  0x1d   : > { %388 = vadd.xlane.f32.xlu0 %v387_v1  ;;  %s1704_s25 = sshll.u32 %s377_s24, 4  ;;  %s2311_s25 = int_to_ptr.vmem [resolvable:$true] %s1704_s25 }
  0x1e   : > { %s1989_s14 = scalar_lea.vmem %s2311_s25, 128  ;;  %p1996_p0 = scmp.lt.s32.totalorder %s2311_s25, %s1994_s16 }
  0x1f   : > { %p1990_p11 = scmp.ne.s32.totalorder %s2311_s25, %s1989_s14  ;;  %p1997_p1 = scmp.lt.s32.totalorder %s1995_s0, %s1989_s14 }
  0x21   : > { %p1991_p12 = pnand %p1990_p11, %p2154_p5  ;;  %p1998_p2 = por %p1997_p1, %p1996_p0 }
  0x23   : > { %p1992_p13 = pneg %p1991_p12 }
  0x25   : > { %p1999_p3 = pnand %p1998_p2, %p1992_p13 }
  0xaa   : > { %v389_v2 = vpop.xlane.xlu0 %388 }
  0xab   : > { %v391_v3 = vmul.f32 0.03125, %v389_v2 }
  0xad   : > { %v392_v4 = vsub.f32 %v2169_v0, %v391_v3 }
  0xaf   : > { %v393_v5 = vmul.f32 %v392_v4, %v392_v4  ;;  %v411_v19 = vmul.f32 %v1769_v18, %v392_v4 }
  0xb1   : > { %v394_v6 = vsel %vm386_vm0, %v393_v5, 0.0 }
  0xb2   : > { %395 = vadd.xlane.f32.xlu0 %v394_v6 }
 0x13f   : > { %v396_v10 = vpop.xlane.xlu0 %395 }
 0x140   : > { %v397_v11 = vmul.f32 0.032258064, %v396_v10 }
 0x142   : > { %1965 = vrsqrt.f32 %v397_v11  ;;  %vm400_vm2 = vcmp.eq.f32.partialorder %v397_v11, inf  ;;  %v403_v14 = vand.u32 2147483648, %v397_v11  ;;  %vm402_vm3 = vcmp.eq.f32.partialorder %v397_v11, 0.0 }
 0x14c   : > { %v1966_v12 = vpop.eup %1965 }
 0x14d   : > { %v399_v13 = vmul.f32 %v1966_v12, %v397_v11 }
 0x14f   : > { %v401_v15 = vsel %vm400_vm2, %v397_v11, %v399_v13 }
 0x150   : > { %v404_v16 = vsel %vm402_vm3, %v403_v14, %v401_v15 }
 0x151   : > { %v412_v17 = vadd.f32 1e-06, %v404_v16 }
 0x153   : > { %1967 = vrcp.f32 %v412_v17 }
 0x15d   : > { %v1968_v20 = vpop.eup %1967 }
 0x15e   : > { %v414_v22 = vmul.f32 %v1968_v20, %v411_v19 }
 0x160   : > { %v421_v23 = vadd.f32 %v1770_v21, %v414_v22 }
 0x162   : > { %v422_v24 = vpack.c.bf16 %v421_v23, %v421_v23 }
 0x164   : > { %1831 = vmatmul.mubr.msk.bf16.vlgmr.msra.gmra.mrb[0].mxu1 %vm386_vm0, %v422_v24 }
 0x165   : > { %1836 = vmatprep.mubr.msk.bf16.mxu1 %vm2054_vm1, %v2053_v8 }
 0x237   : > { %v483_v26 = vpop.f32.mrb[0].mxu1 }
 0x238   : > { %v1832_v27 = vpop.f32.mrb[1].mxu1  ;;  %v484_v28 = vadd.f32 %v1771_v25, %v483_v26 }
 0x239   : > { %v486_v29 = vpop.f32.mrb[2].mxu1 }
 0x23a   : > { %489 = vxpose.xlu1.b32.start.end [1/1] (short) (narrow) %v484_v28, 96  ;;  %v1833_v30 = vpop.f32.mrb[3].mxu1 }
 0x2ba   : > { %v505_v31 = vpop.trf.xlu1 }
 0x2bb   : > { %v521_v37 = vmul.f32 0.35355338, %v505_v31 }
 0x2be   : > { %v506_v32 = vpop.trf.xlu1 }
 0x2bf   : > { %v522_v40 = vmul.f32 0.35355338, %v506_v32 }
 0x2c2   : > { %v507_v33 = vpop.trf.xlu1 }
 0x2c3   : > { %v523_v42 = vmul.f32 0.35355338, %v507_v33 }
 0x2c6   : > { %v508_v34 = vpop.trf.xlu1 }
 0x2c7   : > { %v524_v44 = vmul.f32 0.35355338, %v508_v34 }
 0x2ca   : > { %v509_v35 = vpop.trf.xlu1 }
 0x2cb   : > { %657 = vxpose.xlu1.b32.start.end [1/1] (short) (narrow) %v509_v35, 8 }
 0x2ce   : > { %v510_v36 = vpop.trf.xlu1 }
 0x2cf   : > { %689 = vxpose.xlu0.b32.start.end [1/1] (short) (narrow) %v510_v36, 8 }
 0x2d2   : > { %v511_v38 = vpop.trf.xlu1 }
 0x2d3   : > { %v1943_v39 = vpack.i.bf16 %v511_v38, %v521_v37 }
 0x2d5   : > { %1944 = vxpose.xlu1.b32.start.end [1/1] (short) (narrow) %v1943_v39, 8 }
 0x2d6   : > { %v512_v41 = vpop.trf.xlu1 }
 0x2d7   : > { %v1950_v43 = vpack.i.bf16 %v512_v41, %v522_v40 }
 0x2d9   : > { %589 = vxpose.xlu1.b32.start.end [1/1] (short) (narrow) %v523_v42, 8  ;;  %1951 = vxpose.xlu0.b32.start.end [1/1] (short) (narrow) %v1950_v43, 8 }
 0x2da   : > { %v2201_v45 = vpop.trf.xlu1 }
 0x2dd   : > { %621 = vxpose.xlu0.b32.start.end [1/1] (short) (narrow) %v524_v44, 8 }
 0x2de   : > { %v2203_v46 = vpop.trf.xlu1 }
 0x2e2   : > { %v2205_v47 = vpop.trf.xlu1 }
 0x2e6   : > { %v2207_v48 = vpop.trf.xlu1 }
 0x34b   : > { %v673_v49 = vpop.trf.xlu1 }
 0x34c   : > { %v785_v50 = vpack.c.bf16 %v673_v49, %v673_v49 }
 0x34e   : > { %v926_v51 = vsel %vm921_vm4, %v785_v50, 0 }
 0x34f   : > { %v705_v52 = vpop.trf.xlu0  ;;  %1835 = vmatpush3.bf16.xpose.msra.mxu1 %v926_v51 }
 0x350   : > { %v786_v53 = vpack.c.bf16 %v705_v52, %v705_v52  ;;  %1846 = vmatprep.subr.bf16.mxu1 %v2053_v8 }
 0x352   : > { %v972_v54 = vsel %vm921_vm4, %v786_v53, 0 }
 0x353   : > { %1841 = vmatpush3.bf16.xpose.msra.mxu0 %v972_v54 }
 0x354   : > { %1852 = vmatprep.subr.bf16.mxu0 %v2053_v8 }
 0x355   : > { %v1945_v55 = vpop.trf.xlu1 }
 0x356   : > { %v1949_v56 = vunpack.i.h.bf16 %v1945_v55  ;;  %v1946_v57 = vunpack.i.l.bf16 %v1945_v55 }
 0x358   : > { %v653_v58 = vpack.c.bf16 %v1946_v57, %v1946_v57  ;;  %v787_v59 = vpack.c.bf16 %v1949_v56, %v1949_v56 }
 0x359   : > { %v1952_v60 = vpop.trf.xlu0  ;;  %v605_v3 = vpop.trf.xlu1 }
 0x35a   : > { %v1956_v61 = vunpack.i.h.bf16 %v1952_v60  ;;  %v1953_v62 = vunpack.i.l.bf16 %v1952_v60  ;;  %1837 = vmatmul.mubr.msk.bf16.vlgmr.msra.gmra.mrb[4].mxu1 %vm921_vm4, %v653_v58  ;;  %v1018_v63 = vsel %vm921_vm4, %v787_v59, 0  ;;  %v655_v5 = vpack.c.bf16 %v605_v3, %v605_v3 }
 0x35b   : > { %1848 = vmatprep.mubr.msk.bf16.mxu1 %vm2054_vm1, %v2053_v8  ;;  %1847 = vmatpush3.bf16.xpose.msra.mxu1 %v1018_v63 }
 0x35c   : > { %v654_v1 = vpack.c.bf16 %v1953_v62, %v1953_v62  ;;  %v788_v2 = vpack.c.bf16 %v1956_v61, %v1956_v61  ;;  %1858 = vmatprep.subr.bf16.mxu1 %v2053_v8 }
 0x35d   : > { %v637_v6 = vpop.trf.xlu0 }
 0x35e   : > { %1843 = vmatmul.mubr.msk.bf16.vlgmr.msra.gmra.mrb[0].mxu0 %vm921_vm4, %v654_v1  ;;  %v1064_v4 = vsel %vm921_vm4, %v788_v2, 0  ;;  %v656_v7 = vpack.c.bf16 %v637_v6, %v637_v6 }
 0x35f   : > { %1853 = vmatpush3.bf16.xpose.msra.mxu0 %v1064_v4  ;;  %1854 = vmatprep.mubr.msk.bf16.mxu0 %vm2054_vm1, %v2053_v8 }
 0x360   : > { %1864 = vmatprep.subr.bf16.mxu0 %v2053_v8 }
 0x362   : > { %1849 = vmatmul.mubr.msk.bf16.vlgmr.msra.gmra.mrb[8].mxu1 %vm921_vm4, %v655_v5 }
 0x363   : > { %1860 = vmatprep.mubr.msk.bf16.mxu1 %vm2054_vm1, %v2053_v8 }
 0x366   : > { %1855 = vmatmul.mubr.msk.bf16.vlgmr.msra.gmra.mrb[4].mxu0 %vm921_vm4, %v656_v7 }
 0x367   : > { %1866 = vmatprep.mubr.msk.bf16.mxu0 %vm2054_vm1, %v2053_v8 }
 0x42d   : > { %v962_v9 = vpop.f32.mrb[4].mxu1 }
 0x42e   : > { %v1106_v10 = vsel %vm921_vm4, %v962_v9, -inf  ;;  %v1838_v11 = vpop.f32.mrb[5].mxu1 }
 0x42f   : > { %1107 = vmax.xlane.f32.xlu1 %v1106_v10  ;;  %v965_v12 = vpop.f32.mrb[6].mxu1 }
 0x430   : > { %v1839_v13 = vpop.f32.mrb[7].mxu1 }
 0x431   : > { %v1008_v14 = vpop.f32.mrb[0].mxu0 }
 0x432   : > { %v1844_v15 = vpop.f32.mrb[1].mxu0  ;;  %v1109_v16 = vsel %vm921_vm4, %v1008_v14, -inf }
 0x433   : > { %1110 = vmax.xlane.f32.xlu0 %v1109_v16  ;;  %v1011_v17 = vpop.f32.mrb[2].mxu0 }
 0x434   : > { %v1845_v18 = vpop.f32.mrb[3].mxu0 }
 0x435   : > { %v1054_v19 = vpop.f32.mrb[8].mxu1 }
 0x436   : > { %v1112_v20 = vsel %vm921_vm4, %v1054_v19, -inf  ;;  %v1850_v21 = vpop.f32.mrb[9].mxu1 }
 0x437   : > { %1113 = vmax.xlane.f32.xlu1 %v1112_v20  ;;  %v1057_v22 = vpop.f32.mrb[10].mxu1 }
 0x438   : > { %v1851_v24 = vpop.f32.mrb[11].mxu1 }
 0x439   : > { %v1100_v23 = vpop.f32.mrb[4].mxu0 }
 0x43a   : > { %v1115_v25 = vsel %vm921_vm4, %v1100_v23, -inf  ;;  %v1856_v26 = vpop.f32.mrb[5].mxu0 }
 0x43b   : > { %v1103_v27 = vpop.f32.mrb[6].mxu0  ;;  %1116 = vmax.xlane.f32.xlu1 %v1115_v25 }
 0x43c   : > { %v1857_v28 = vpop.f32.mrb[7].mxu0 }
 0x4bc   : > { %v1108_v29 = vpop.xlane.xlu1 %1107 }
 0x4bd   : > { %v1118_v30 = vsub.f32 %v962_v9, %v1108_v29 }
 0x4bf   : > { %v1122_v31 = vmul.f32 1.442695, %v1118_v30 }
 0x4c0   : > { %v1111_v32 = vpop.xlane.xlu0 %1110 }
 0x4c1   : > { %1969 = vpow2.f32 %v1122_v31  ;;  %v1119_v33 = vsub.f32 %v1008_v14, %v1111_v32 }
 0x4c3   : > { %v1124_v34 = vmul.f32 1.442695, %v1119_v33 }
 0x4c4   : > { %v1114_v35 = vpop.xlane.xlu1 %1113 }
 0x4c5   : > { %1971 = vpow2.f32 %v1124_v34  ;;  %v1120_v36 = vsub.f32 %v1054_v19, %v1114_v35 }
 0x4c7   : > { %v1126_v37 = vmul.f32 1.442695, %v1120_v36 }
 0x4c8   : > { %v1117_v44 = vpop.xlane.xlu1 %1116 }
 0x4c9   : > { %1973 = vpow2.f32 %v1126_v37  ;;  %v1121_v49 = vsub.f32 %v1100_v23, %v1117_v44  ;;  %v1961_v44 = vld [vmem:[%s2361_s9] sm:$0xff]  }
 0x4cb   : > { %v1970_v38 = vpop.eup %1969  ;;  %v1128_v50 = vmul.f32 1.442695, %v1121_v49  ;;  %v1962_v49 = vld [vmem:[%s2361_s9 + $0x8] sm:$0xff]  }
 0x4cc   : > { %v1130_v39 = vsel %vm921_vm4, %v1970_v38, 0.0 }
 0x4cd   : > { %1131 = vadd.xlane.f32.xlu1 %v1130_v39  ;;  %1975 = vpow2.f32 %v1128_v50 }
 0x4cf   : > { %v1972_v40 = vpop.eup %1971 }
 0x4d0   : > { %v1133_v41 = vsel %vm921_vm4, %v1972_v40, 0.0 }
 0x4d1   : > { %1134 = vadd.xlane.f32.xlu0 %v1133_v41 }
 0x4d3   : > { %v1974_v42 = vpop.eup %1973 }
 0x4d4   : > { %v1136_v43 = vsel %vm921_vm4, %v1974_v42, 0.0 }
 0x4d5   : > { %1137 = vadd.xlane.f32.xlu1 %v1136_v43  ;;  %v1959_v43 = vld [vmem:[%s2359_s7] sm:$0xff]  }
 0x4d7   : > { %v1976_v51 = vpop.eup %1975 }
 0x4d8   : > { %v1139_v52 = vsel %vm921_vm4, %v1976_v51, 0.0 }
 0x4fe   : > { %821 = vxpose.xlu0.b32.start.end [1/1] (short) (narrow) %v2203_v46, 8 }
 0x508   : > { %789 = vxpose.xlu1.b32.start.end [1/1] (short) (narrow) %v2201_v45, 8 }
 0x52b   : > { %1140 = vadd.xlane.f32.xlu0 %v1139_v52 }
 0x558   : > { %853 = vxpose.xlu0.b32.start.end [1/1] (short) (narrow) %v2205_v47, 8 }
 0x55a   : > { %v1132_v54 = vpop.xlane.xlu1 %1131 }
 0x55c   : > { %885 = vxpose.xlu0.b32.start.end [1/1] (short) (narrow) %v2207_v48, 8 }
 0x55e   : > { %v1135_v53 = vpop.xlane.xlu0 %1134 }
 0x55f   : > { %1977 = vrcp.f32 %v1135_v53 }
 0x560   : > { %1979 = vrcp.f32 %v1132_v54 }
 0x562   : > { %v1138_v59 = vpop.xlane.xlu1 %1137 }
 0x563   : > { %1981 = vrcp.f32 %v1138_v59  ;;  %v1784_v59 = vld [vmem:[%s2358_s6] ss:$0 sm:$0xff] }
 0x569   : > { %v1978_v55 = vpop.eup %1977 }
 0x56a   : > { %v1147_v45 = vmul.f32 %v1978_v55, %v1972_v40  ;;  %v1980_v47 = vpop.eup %1979 }
 0x56b   : > { %v1146_v60 = vmul.f32 %v1980_v47, %v1970_v38 }
 0x56c   : > { %v1151_v58 = vpack.c.bf16 %v1147_v45, %v1147_v45 }
 0x56d   : > { %v1150_v63 = vpack.c.bf16 %v1146_v60, %v1146_v60  ;;  %v1982_v2 = vpop.eup %1981 }
 0x56e   : > { %v1148_v4 = vmul.f32 %v1982_v2, %v1974_v42 }
 0x570   : > { %v1152_v12 = vpack.c.bf16 %v1148_v4, %v1148_v4 }
 0x57e   : > { %v837_v46 = vpop.trf.xlu0 }
 0x57f   : > { %v918_v56 = vpack.c.bf16 %v837_v46, %v837_v46 }
 0x581   : > { %v1205_v57 = vsel %vm1157_vm5, %v918_v56, 0  ;;  %v1783_v56 = vld [vmem:[%s2357_s5] ss:$0 sm:$0xff] }
 0x582   : > { %1865 = vmatpush3.bf16.msra.mxu0 %v1205_v57 }
 0x583   : > { %1876 = vmatprep.subr.bf16.mxu0 %v2053_v8 }
 0x585   : > { %1867 = vmatmul.mubr.msk.bf16.vlgmr.msra.gmra.mrb[8].mxu0 %vm921_vm4, %v1151_v58 }
 0x586   : > { %1878 = vmatprep.mubr.msk.bf16.mxu0 %vm2054_vm1, %v2053_v8 }
 0x588   : > { %v805_v48 = vpop.trf.xlu1 }
 0x589   : > { %v917_v61 = vpack.c.bf16 %v805_v48, %v805_v48 }
 0x58b   : > { %v1159_v62 = vsel %vm1157_vm5, %v917_v61, 0  ;;  %v1963_v61 = vld [vmem:[%s2361_s9 + $0x10] sm:$0xff]  }
 0x58c   : > { %1859 = vmatpush3.bf16.msra.mxu1 %v1159_v62  ;;  %v1964_v62 = vld [vmem:[%s2361_s9 + $0x18] sm:$0xff]  }
 0x58d   : > { %1870 = vmatprep.subr.bf16.mxu1 %v2053_v8 }
 0x58f   : > { %1861 = vmatmul.mubr.msk.bf16.vlgmr.msra.gmra.mrb[12].mxu1 %vm921_vm4, %v1150_v63  ;;  %v1785_v63 = vld [vmem:[%s2360_s8] ss:$0 sm:$0xff] }
 0x590   : > { %1872 = vmatprep.mubr.msk.bf16.mxu1 %vm2054_vm1, %v2053_v8 }
 0x5b8   : > { %v1141_v1 = vpop.xlane.xlu0 %1140 }
 0x5b9   : > { %1983 = vrcp.f32 %v1141_v1 }
 0x5c3   : > { %v1984_v6 = vpop.eup %1983 }
 0x5c4   : > { %v1149_v10 = vmul.f32 %v1984_v6, %v1976_v51 }
 0x5c6   : > { %v1153_v14 = vpack.c.bf16 %v1149_v10, %v1149_v10 }
 0x5d8   : > { %v869_v3 = vpop.trf.xlu0 }
 0x5d9   : > { %v919_v5 = vpack.c.bf16 %v869_v3, %v869_v3 }
 0x5db   : > { %v1251_v7 = vsel %vm1157_vm5, %v919_v5, 0 }
 0x5dc   : > { %v901_v9 = vpop.trf.xlu0  ;;  %1871 = vmatpush3.bf16.msra.mxu1 %v1251_v7 }
 0x5dd   : > { %v920_v11 = vpack.c.bf16 %v901_v9, %v901_v9  ;;  %1882 = vmatprep.subr.bf16.mxu1 %v2053_v8 }
 0x5df   : > { %v1297_v13 = vsel %vm1157_vm5, %v920_v11, 0  ;;  %1873 = vmatmul.mubr.msk.bf16.vlgmr.msra.gmra.mrb[16].mxu1 %vm921_vm4, %v1152_v12 }
 0x5e0   : > { %1877 = vmatpush3.bf16.msra.mxu0 %v1297_v13  ;;  %1886 = vmatprep.mubr.msk.bf16.mxu1 %vm2054_vm1, %v2053_v8 }
 0x5e1   : > { %1890 = vmatprep.subr.bf16.mxu0 %v2053_v8  ;;  %1883 = vmatpush3.bf16.msra.mxu1 %v1959_v43 }
 0x5e2   : > { %1884 = vmatprep.subr.bf16.mxu1 %v2053_v8 }
 0x5e3   : > { %1879 = vmatmul.mubr.msk.bf16.vlgmr.msra.gmra.mrb[12].mxu0 %vm921_vm4, %v1153_v14 }
 0x5e4   : > { %1898 = vmatprep.mubr.msk.bf16.mxu0 %vm2054_vm1, %v2053_v8  ;;  %1891 = vmatpush3.bf16.msra.mxu0 %v1961_v44 }
 0x5e5   : > { %1892 = vmatprep.subr.bf16.mxu0 %v2053_v8 }
 0x5e8   : > { %1893 = vmatpush3.bf16.msra.mxu0 %v1962_v49 }
 0x5e9   : > { %1894 = vmatprep.subr.bf16.mxu0 %v2053_v8 }
 0x5ec   : > { %1895 = vmatpush3.bf16.msra.mxu0 %v1963_v61 }
 0x5ed   : > { %1896 = vmatprep.subr.bf16.mxu0 %v2053_v8  ;;  %v1789_v8 = vld [vmem:[%s2362_s10] ss:$0 sm:$0xff] }
 0x5f0   : > { %1897 = vmatpush3.bf16.msra.mxu0 %v1964_v62 }
 0x658   : > { %v1241_v15 = vpop.f32.mrb[8].mxu0 }
 0x659   : > { %v1868_v16 = vpop.f32.mrb[9].mxu0  ;;  %1371 = vxpose.xlu0.b32.start.end [1/1] (short) (narrow) %v1241_v15, 8 }
 0x65a   : > { %v1244_v17 = vpop.f32.mrb[10].mxu0 }
 0x65b   : > { %v1869_v18 = vpop.f32.mrb[11].mxu0 }
 0x662   : > { %v1195_v19 = vpop.f32.mrb[12].mxu1 }
 0x663   : > { %1339 = vxpose.xlu1.b32.start.end [1/1] (short) (narrow) %v1195_v19, 8  ;;  %v1862_v20 = vpop.f32.mrb[13].mxu1 }
 0x664   : > { %v1198_v21 = vpop.f32.mrb[14].mxu1 }
 0x665   : > { %v1863_v22 = vpop.f32.mrb[15].mxu1 }
 0x6b2   : > { %v1287_v23 = vpop.f32.mrb[16].mxu1 }
 0x6b3   : > { %1403 = vxpose.xlu1.b32.start.end [1/1] (short) (narrow) %v1287_v23, 8  ;;  %v1874_v24 = vpop.f32.mrb[17].mxu1 }
 0x6b4   : > { %v1290_v25 = vpop.f32.mrb[18].mxu1 }
 0x6b5   : > { %v1875_v26 = vpop.f32.mrb[19].mxu1 }
 0x6b6   : > { %v1333_v27 = vpop.f32.mrb[12].mxu0 }
 0x6b7   : > { %1435 = vxpose.xlu0.b32.start.end [1/1] (short) (narrow) %v1333_v27, 8  ;;  %v1880_v28 = vpop.f32.mrb[13].mxu0 }
 0x6b8   : > { %v1336_v29 = vpop.f32.mrb[14].mxu0 }
 0x6b9   : > { %v1881_v30 = vpop.f32.mrb[15].mxu0 }
 0x6d9   : > { %v1387_v32 = vpop.trf.xlu0 }
 0x6e3   : > { %v1355_v31 = vpop.trf.xlu1 }
 0x6e4   : > { %1467 = vxpose.xlu1.b32.start [1/4] (short) (narrow) %v1355_v31, 8 }
 0x6e8   : > { %1468 = vxpose.xlu1.b32.cont [2/4] (short) (narrow) %v1387_v32, 8 }
 0x733   : > { %v1419_v33 = vpop.trf.xlu1 }
 0x734   : > { %1469 = vxpose.xlu1.b32.cont [3/4] (short) (narrow) %v1419_v33, 8 }
 0x737   : > { %v1451_v34 = vpop.trf.xlu0 }
 0x738   : > { %1470 = vxpose.xlu1.b32.end [4/4] (short) (narrow) %v1451_v34, 8 }
 0x7ac   : > { %v1483_v35 = vpop.trf.xlu1 }
 0x7ad   : > { %v2262_v36 = vadd.f32 %v1483_v35, %v2169_v0  ;;  %v1960_v0 = vld [vmem:[%s2359_s7 + $0x8] sm:$0xff]  }
 0x7ae   : > { %1885 = vmatpush3.bf16.msra.mxu1 %v1960_v0 }
 0x7af   : > { %v1502_v37 = vsel %vm386_vm0, %v2262_v36, 0.0 }
 0x7b0   : > { %1503 = vadd.xlane.f32.xlu0 %v1502_v37 }
 0x83d   : > { %v1504_v38 = vpop.xlane.xlu0 %1503 }
 0x83e   : > { %v1505_v39 = vmul.f32 0.03125, %v1504_v38 }
 0x840   : > { %v1506_v40 = vsub.f32 %v2262_v36, %v1505_v39 }
 0x842   : > { %v1507_v41 = vmul.f32 %v1506_v40, %v1506_v40  ;;  %v1525_v57 = vmul.f32 %v1783_v56, %v1506_v40 }
 0x844   : > { %v1508_v42 = vsel %vm386_vm0, %v1507_v41, 0.0 }
 0x845   : > { %1509 = vadd.xlane.f32.xlu1 %v1508_v42 }
 0x8d2   : > { %v1510_v50 = vpop.xlane.xlu1 %1509 }
 0x8d3   : > { %v1511_v51 = vmul.f32 0.032258064, %v1510_v50 }
 0x8d5   : > { %1985 = vrsqrt.f32 %v1511_v51  ;;  %vm1514_vm6 = vcmp.eq.f32.partialorder %v1511_v51, inf  ;;  %v1517_v54 = vand.u32 2147483648, %v1511_v51  ;;  %vm1516_vm7 = vcmp.eq.f32.partialorder %v1511_v51, 0.0 }
 0x8df   : > { %v1986_v52 = vpop.eup %1985 }
 0x8e0   : > { %v1513_v53 = vmul.f32 %v1986_v52, %v1511_v51 }
 0x8e2   : > { %v1515_v55 = vsel %vm1514_vm6, %v1511_v51, %v1513_v53 }
 0x8e3   : > { %v1518_v46 = vsel %vm1516_vm7, %v1517_v54, %v1515_v55 }
 0x8e4   : > { %v1526_v45 = vadd.f32 1e-06, %v1518_v46 }
 0x8e6   : > { %1987 = vrcp.f32 %v1526_v45 }
 0x8f0   : > { %v1988_v58 = vpop.eup %1987 }
 0x8f1   : > { %v1528_v47 = vmul.f32 %v1988_v58, %v1525_v57 }
 0x8f3   : > { %v1535_v48 = vadd.f32 %v1784_v59, %v1528_v47 }
 0x8f5   : > { %v1536_v60 = vpack.c.bf16 %v1535_v48, %v1535_v48 }
 0x8f7   : > { %1887 = vmatmul.mubr.msk.bf16.vlgmr.msra.gmra.mrb[20].mxu1 %vm386_vm0, %v1536_v60 }
 0x9ca   : > { %v1597_v1 = vpop.f32.mrb[20].mxu1 }
 0x9cb   : > { %v1598_v2 = vadd.f32 %v1785_v63, %v1597_v1  ;;  %v1888_v3 = vpop.f32.mrb[21].mxu1 }
 0x9cc   : > { %v1600_v4 = vpop.f32.mrb[22].mxu1 }
 0x9cd   : > { %v1603_v5 = vmax.f32 %v1598_v2, 0.0  ;;  %v1889_v6 = vpop.f32.mrb[23].mxu1 }
 0x9cf   : > { %v1604_v7 = vpack.c.bf16 %v1603_v5, %v1603_v5 }
 0x9d1   : > { %1899 = vmatmul.mubr.msk.bf16.vlgmr.msra.gmra.mrb[16].mxu0 %vm1644_vm8, %v1604_v7 }
 0xaa4   : > { %v1682_v9 = vpop.f32.mrb[16].mxu0 }
 0xaa5   : > { %v1683_v10 = vadd.f32 %v1789_v8, %v1682_v9  ;;  %v1900_v11 = vpop.f32.mrb[17].mxu0 }
 0xaa6   : > { %v1685_v12 = vpop.f32.mrb[18].mxu0 }
 0xaa7   : > { %v1688_v13 = vadd.f32 %v1683_v10, %v2262_v36  ;;  %v1901_v14 = vpop.f32.mrb[19].mxu0 }
 0xaa9   : > { %1689 = vst.msk [vmem:[%s377_s24] sm:$0xff] %vm386_vm0, %v1688_v13 }
 0xaaa   : > { %2002 = shalt.err (!%p1999_p3)
}
 0xaab   : > { %s2003_s13 = scalar_lea.hbm %s2309_s12, 128  ;;  %s2007_s29 = scalar_lea.hbm %s2363_s11, 256 }
 0xaac   : > { %p2004_p4 = scmp.ne.s32.totalorder %s2309_s12, %s2003_s13  ;;  %p2008_p9 = scmp.lt.u32.totalorder %s2309_s12, %s2363_s11 }
 0xaad   : > { %p2009_p10 = scmp.lt.u32.totalorder %s2007_s29, %s2003_s13  ;;  %p2011_p12 = scmp.lt.u32.totalorder %s2003_s13, %s2309_s12 }
 0xaae   : > { %p2005_p7 = pnand %p2004_p4, %p2154_p5 }
 0xaaf   : > { %p2010_p11 = por %p2009_p10, %p2008_p9 }
 0xab0   : > { %p2006_p8 = pneg %p2005_p7 }
 0xab1   : > { %p2012_p13 = por %p2011_p12, %p2010_p11 }
 0xab3   : > { %p2013_p0 = pnand %p2012_p13, %p2006_p8 }
 0xab5   : > { %2016 = shalt.err (!%p2013_p0)
}
 0xab6   : > { %1902 = dma.vmem_to_hbm [thread:$0]  (%p2154_p5), %s2311_s25, 128, %s2309_s12, %s1691_s21  }
 0xab7 PF: > { %p1908_p1 = scmp.ge.s32.totalorder %s2051_s20, 2  ;;  %s1716_s0 = sand.u32 1, %s2039_s17  }
 0xab8   : > { %s1717_s14 = scalar_lea.sflag [#allocation3], %s1716_s0 }
 0xab9   : > { %p1905_p2 = pnand %p1908_p1, %p2158_p6 }
 0xabb   : > { %2034 = dma.done.wait (!%p1905_p2), %s1717_s14, 128  }
 0xabc   : > { %2036 = vsyncadd (!%p1905_p2), %s1717_s14, 4294967168  ;;  %p21_p3 = scmp.ge.s32.totalorder %s2141_s23, 4   ;;  %s2368_s17 = smov %s2043_s18 }
 0xabd   : > { %s2369_s18 = smov %s2047_s19  ;;  %s2370_s19 = smov %s2152_s26 }
 0xabe   : > { %s2371_s20 = smov %s2141_s23  ;;  %23 = sbr.rel (!%p21_p3) target bundleno = 5 (0x5), region = 99 }
 0xac5   :  { %1722 = vsyncpa [#allocation3], 1 }
 0xac6   :  { %1724 = vsyncpa [#allocation3 + $0x1], 1 }

</bundles_post_ra>
